<compile_context>
chip_gen: v5e
topology: v5e:2x2
jax: 0.10.0
libtpu: 0.0.40
codegen_flags: <defaults>
</compile_context>

<pallas_src>
import math
import functools
import itertools

import numpy as np
import jax
import jax.numpy as jnp
from jax import lax
from jax.experimental import pallas as pl
from jax.experimental.pallas import tpu as pltpu


# ----------------------------------------------------------------------------
# Static combinatorics (replicates basis_mat / fac from the PyTorch code):
# coef[k][flat(j0..jk)] = k! / prod_l (count of label l in (j0..jk))!
# flat index is base-n_L with j0 the slowest digit (matches ger(...).flatten()).
# ----------------------------------------------------------------------------
@functools.lru_cache(maxsize=None)
def _level_coef(k, n_L):
    vals = []
    for tup in itertools.product(range(n_L), repeat=k + 1):
        denom = 1
        for lbl in range(n_L):
            denom *= math.factorial(tup.count(lbl))
        vals.append(math.factorial(k) / denom)
    return np.asarray(vals, dtype=np.float32)


@functools.lru_cache(maxsize=None)
def _level_coefT(k, n_L):
    # [n_L**(s-1), n_L]: column j0 holds coef(j0, rest) for every "rest" digit.
    s = k + 1
    coef = _level_coef(k, n_L)
    return np.ascontiguousarray(coef.reshape(n_L, n_L ** (s - 1)).T)


# ----------------------------------------------------------------------------
# Tiling heuristics
# ----------------------------------------------------------------------------
def _vmem_capacity_bytes():
    try:
        return int(pltpu.get_tpu_info().vmem_capacity_bytes)
    except Exception:                       # non-TPU trace / older runtime
        return 64 << 20                     # conservative: v7x per-TC VMEM


def _pick_tiles(C, s, n_L, n_Vp, W0):
    """Returns (tc, cs): grid lane tile and in-kernel vreg sub-chunk.
    Both are power-of-two multiples of 128 and cs divides tc."""
    # vreg-pressure bound for the in-kernel chunk: keep the per-lane live set
    # (iota + one-hot + fold accumulators + index rows) well under the 256 KiB
    # vreg file so the unrolled fold loops do not spill.
    per_lane_words = 2 * n_Vp + W0 + max(W0 // n_L, 1) + n_L + 10
    cs = 128
    while 2 * cs * per_lane_words * 4 <= (96 << 10):
        cs *= 2

    # VMEM bound on the grid tile: double-buffered index block (8 padded
    # sublanes) + the two resident tables.  Generation-aware budget.
    budget = _vmem_capacity_bytes() // 4
    resident = (W0 + n_L) * n_Vp * 4
    max_tc = 128
    while max_tc < (32 << 10) and (2 * 8 * (2 * max_tc) * 4 + resident) <= budget:
        max_tc *= 2

    # Grid lane tile: a single minimal block for tiny levels, otherwise grown
    # to amortise the ~0.35us per-grid-step overhead while keeping >=2 blocks
    # so both v7x TensorCores get work on large levels.
    c_ceil = 128
    while c_ceil < C:
        c_ceil *= 2
    tc = min(cs, c_ceil, max_tc)
    while tc * 2 <= max_tc and C > 2 * tc:
        tc *= 2
    cs = min(cs, tc)
    return tc, cs


# ----------------------------------------------------------------------------
# Pallas kernel: one clique-size level, one C-tile of cliques per grid step.
#   m0_ref : [W0, n_Vp]    f32  coefT @ P.T (member-0 fold pre-applied), resident
#   pt_ref : [n_L, n_Vp]   f32  P.T with zero-padded columns, resident
#   idx_ref: [nc, s, cs]   i32  member node indices, cliques on lanes
#                               (-1 marks padded cliques -> contribute 0)
#   o_ref  : [1, 1, 128]   f32  lane-wise partial sums for this grid block
# ----------------------------------------------------------------------------
def _clique_level_kernel(m0_ref, pt_ref, idx_ref, o_ref):
    W0, n_Vp = m0_ref.shape
    n_L = pt_ref.shape[0]
    nc, s, cs = idx_ref.shape

    m0 = m0_ref[...]                                       # tiny resident tables
    pt = pt_ref[...]
    # one-hot row template, hoisted out of the chunk loop (loop invariant)
    iota_v = lax.broadcasted_iota(jnp.int32, (n_Vp, cs), 0)

    def contract(tbl, onehot):
        # tbl: [R, n_Vp], onehot: [n_Vp, cs] -> [R, cs]
        if n_Vp >= 64:
            # contraction dim worth routing to the MXU
            return jnp.dot(tbl, onehot, preferred_element_type=jnp.float32)
        # tiny node count: lane-dense VPU outer-product accumulation
        out = tbl[:, 0:1] * onehot[0:1, :]
        for v in range(1, n_Vp):
            out = out + tbl[:, v:v + 1] * onehot[v:v + 1, :]
        return out

    def chunk_body(ci, part):
        ids = idx_ref[ci]                                  # [s, cs] int32 (dyn. lead axis)
        # member 0: gather + multinomial-coefficient fold in one contraction
        oh = (iota_v == ids[0:1, :]).astype(jnp.float32)   # [n_Vp, cs]
        A = contract(m0, oh)                               # [W0, cs]
        # remaining members: gather, then sublane-sliced label contraction
        w = W0
        for m in range(1, s):
            oh = (iota_v == ids[m:m + 1, :]).astype(jnp.float32)
            p = contract(pt, oh)                           # [n_L, cs]
            w //= n_L
            acc = p[0:1, :] * A[0:w, :]
            for j in range(1, n_L):
                acc = acc + p[j:j + 1, :] * A[j * w:(j + 1) * w, :]
            A = acc                                        # [w, cs]
        # A is [1, cs]; log-depth lane-aligned fold down to one vreg row
        while A.shape[1] > 128:
            h = A.shape[1] // 2
            A = A[:, :h] + A[:, h:]
        return part + A

    part = lax.fori_loop(0, nc, chunk_body, jnp.zeros((1, 128), jnp.float32))
    o_ref[...] = part.reshape(1, 1, 128)


@functools.partial(jax.jit, static_argnames=("nc",))
def _clique_level_partials(m0, ptp, idx_chunks, *, nc):
    """m0: [W0, n_Vp]; ptp: [n_L, n_Vp]; idx_chunks: [total_chunks, s, cs] int32.
    Returns lane-wise partial sums of shape [nb, 1, 128]."""
    W0, n_Vp = m0.shape
    n_L = ptp.shape[0]
    total_chunks, s, cs = idx_chunks.shape
    nb = total_chunks // nc
    tc = nc * cs

    # Explicit VMEM limit only if the working set outgrows the smallest scoped
    # default (16 MiB, v5e); the fused-gather inputs are index-only so this is
    # normally far below it.
    vmem_need = 2 * 8 * 2 * tc * 4 + 2 * (W0 + n_L) * n_Vp * 4 + nb * 512
    cp = dict(dimension_semantics=("parallel",))
    if vmem_need > (16 << 20):
        cp["vmem_limit_bytes"] = int(min(_vmem_capacity_bytes() // 2, 2 * vmem_need))

    return pl.pallas_call(
        _clique_level_kernel,
        out_shape=jax.ShapeDtypeStruct((nb, 1, 128), jnp.float32),
        grid_spec=pltpu.PrefetchScalarGridSpec(
            num_scalar_prefetch=0,
            grid=(nb,),
            in_specs=[
                pl.BlockSpec((W0, n_Vp), lambda i: (0, 0)),    # resident M0
                pl.BlockSpec((n_L, n_Vp), lambda i: (0, 0)),   # resident P.T
                pl.BlockSpec((nc, s, cs), lambda i: (i, 0, 0)),  # clique index tile
            ],
            out_specs=pl.BlockSpec((1, 1, 128), lambda i: (i, 0, 0)),
        ),
        compiler_params=pltpu.CompilerParams(**cp),
    )(m0, ptp, idx_chunks)


# ----------------------------------------------------------------------------
# JAX/Pallas port of the PyTorch Model
# ----------------------------------------------------------------------------
class PallasModel:
    def __init__(self, initial_data, x_known, exp_base):
        initial_data = np.asarray(initial_data, dtype=np.float32)
        x_known = np.asarray(x_known, dtype=np.float32)
        self.exp_base = float(exp_base)
        self.n_V, self.n_L = initial_data.shape
        self.fixed_indices = np.asarray(x_known[:, 0], dtype=np.int32)
        self.fixed_params = jnp.asarray(x_known[:, 1:], dtype=jnp.float32)
        mask = np.ones(self.n_V, dtype=bool)
        mask[self.fixed_indices] = False
        self.trainable_indices = np.nonzero(mask)[0].astype(np.int32)
        self.trainable_params = jnp.asarray(initial_data[mask], dtype=jnp.float32)
        # padded node-column count (multiple of 8 sublanes for the one-hot)
        self.n_Vp = max(8, ((self.n_V + 7) // 8) * 8)
        self._coefT_dev = {}  # k -> device-resident [n_L**k, n_L] table (cached)

    def _coefT(self, k):
        if k not in self._coefT_dev:
            self._coefT_dev[k] = jnp.asarray(_level_coefT(k, self.n_L))
        return self._coefT_dev[k]

    def forward(self, simplices):
        n_L, n_V, n_Vp = self.n_L, self.n_V, self.n_Vp
        # --- glue: parameter scatter + ONE softmax over the tiny table ------
        full = jnp.zeros((n_V, n_L), dtype=jnp.float32)
        full = full.at[jnp.asarray(self.fixed_indices)].set(self.fixed_params)
        full = full.at[jnp.asarray(self.trainable_indices)].set(self.trainable_params)
        P = jax.nn.softmax(full, axis=1)                               # [n_V, n_L]
        # P.T padded with zero columns (sentinel / padded nodes contribute 0)
        ptp = jnp.zeros((n_L, n_Vp), jnp.float32).at[:, :n_V].set(P.T)

        total = jnp.float32(0.0)
        # TODO(synk): all levels could share a single pallas_call (grid over
        # concatenated C-blocks with level-id/offset tables in SMEM); levels
        # stay separate calls here, jit-cached per static tiling signature.
        for k in range(1, len(simplices)):        # level 0 excluded by objective
            if len(simplices[k]) == 0:
                continue
            idx_np = np.asarray(simplices[k], dtype=np.int32)          # [C, s]
            C, s = idx_np.shape
            W0 = n_L ** (s - 1)

            if n_V > 1024 or W0 * n_Vp > (1 << 19):
                # TODO(synk): very large node counts / label powers need a
                # DMA-gather kernel variant; fall back to plain XLA here.
                prod = jnp.take(P, jnp.asarray(idx_np[:, 0]), axis=0)
                for m in range(1, s):
                    pm = jnp.take(P, jnp.asarray(idx_np[:, m]), axis=0)
                    prod = (prod[:, :, None] * pm[:, None, :]).reshape(C, -1)
                coef = jnp.asarray(_level_coef(k, n_L))
                total = total + (self.exp_base ** k) * jnp.sum(jnp.dot(prod, coef))
                continue

            coefT = self._coefT(k)                                     # [W0, n_L]
            m0 = jnp.dot(coefT, ptp)                                   # [W0, n_Vp] (tiny)
            tc, cs = _pick_tiles(C, s, n_L, n_Vp, W0)
            nc = tc // cs
            C_pad = pl.cdiv(C, tc) * tc
            # host-side: pad with -1 (zero-contribution cliques), chunk along C
            idx_T = np.full((s, C_pad), -1, dtype=np.int32)
            idx_T[:, :C] = idx_np.T
            idx_chunks = np.ascontiguousarray(
                idx_T.reshape(s, C_pad // cs, cs).transpose(1, 0, 2))  # [chunks, s, cs]
            partials = _clique_level_partials(
                m0, ptp, jnp.asarray(idx_chunks), nc=nc)               # [nb, 1, 128]
            total = total + (self.exp_base ** k) * jnp.sum(partials)
        return total


# ----------------------------------------------------------------------------
# NumPy reference (mirrors the PyTorch forward exactly)
# ----------------------------------------------------------------------------
def _reference_objective(initial_data, x_known, exp_base, simplices):
    initial_data = np.asarray(initial_data, dtype=np.float32)
    n_V, n_L = initial_data.shape
    fixed_idx = x_known[:, 0].astype(int)
    full = initial_data.copy()
    full[fixed_idx] = x_known[:, 1:]
    e = np.exp(full - full.max(axis=1, keepdims=True))
    P = e / e.sum(axis=1, keepdims=True)
    total = 0.0
    for k in range(1, len(simplices)):
        coef = _level_coef(k, n_L)
        for clique in simplices[k]:
            outer = P[clique[0]]
            for v_idx in clique[1:]:
                outer = np.outer(outer, P[v_idx]).ravel()
            total += (exp_base ** k) * float(np.dot(coef, outer))
    return total


if __name__ == "__main__":
    key = jax.random.PRNGKey(0)
    n_V, n_L = 8, 4
    k1, k2 = jax.random.split(key)
    initial_data = np.asarray(jax.random.normal(k1, (n_V, n_L), dtype=jnp.float32))

    # x_known rows: [node_index, logit_0, ..., logit_{n_L-1}]
    fixed_logits = np.asarray(jax.random.normal(k2, (2, n_L), dtype=jnp.float32))
    x_known = np.concatenate(
        [np.array([[1.0], [5.0]], dtype=np.float32), fixed_logits], axis=1
    )
    exp_base = 2.0

    simplices = [
        [[i] for i in range(n_V)],                                  # size-1 (excluded)
        [[0, 1], [1, 2], [2, 3], [4, 5], [5, 6], [6, 7], [0, 7]],   # edges
        [[0, 1, 2], [4, 5, 6], [5, 6, 7]],                          # triangles
    ]

    model = PallasModel(initial_data, x_known, exp_base)
    result = jax.block_until_ready(model.forward(simplices))

    ref = _reference_objective(initial_data, x_known, exp_base, simplices)
    assert np.allclose(float(result), ref, rtol=1e-4, atol=1e-5), (float(result), ref)
    print("KERNEL_OK")
</pallas_src>

<mosaic_0001>
module attributes {stable_mosaic.version = 11 : i64} {
  func.func @_clique_level_kernel(%arg0: i32, %arg1: memref<4x8xf32, #tpu.memory_space<vmem>>, %arg2: memref<4x8xf32, #tpu.memory_space<vmem>>, %arg3: memref<1x2x128xi32, #tpu.memory_space<vmem>>, %arg4: memref<1x1x128xf32, #tpu.memory_space<vmem>>) attributes {dimension_semantics = [#tpu.dimension_semantics<parallel>], iteration_bounds = array<i64: 1>, scalar_prefetch = 0 : i64, scratch_operands = 0 : i64, tpu.core_type = #tpu.core_type<tc>, window_params = [{pipeline_mode = #tpu.pipeline_mode<synchronous>, transform_indices = @transform_0, window_bounds = array<i64: 4, 8>}, {pipeline_mode = #tpu.pipeline_mode<synchronous>, transform_indices = @transform_1, window_bounds = array<i64: 4, 8>}, {transform_indices = @transform_2, window_bounds = array<i64: 1, 2, 128>}, {transform_indices = @transform_3, window_bounds = array<i64: 1, 1, 128>}]} {
    %c0 = arith.constant 0 : index
    %c0_0 = arith.constant 0 : index
    %0 = vector.load %arg1[%c0, %c0_0] : memref<4x8xf32, #tpu.memory_space<vmem>>, vector<4x8xf32>
    %c0_1 = arith.constant 0 : index
    %c0_2 = arith.constant 0 : index
    %1 = vector.load %arg2[%c0_1, %c0_2] : memref<4x8xf32, #tpu.memory_space<vmem>>, vector<4x8xf32>
    %2 = tpu.iota {dimensions = array<i32: 0>} : vector<8x128xi32>
    %cst = arith.constant 0.000000e+00 : f32
    %3 = vector.broadcast %cst : f32 to vector<1x128xf32>
    %c0_i32 = arith.constant 0 : i32
    %4 = arith.index_cast %c0_i32 : i32 to index
    %c0_3 = arith.constant 0 : index
    %c0_4 = arith.constant 0 : index
    %5 = vector.load %arg3[%4, %c0_3, %c0_4] : memref<1x2x128xi32, #tpu.memory_space<vmem>>, vector<1x2x128xi32>
    %6 = vector.shape_cast %5 : vector<1x2x128xi32> to vector<2x128xi32>
    %7 = vector.extract_strided_slice %6 {offsets = [0, 0], sizes = [1, 128], strides = [1, 1]} : vector<2x128xi32> to vector<1x128xi32>
    %8 = vector.broadcast %7 : vector<1x128xi32> to vector<8x128xi32>
    %9 = arith.cmpi eq, %2, %8 : vector<8x128xi32>
    %10 = arith.extui %9 : vector<8x128xi1> to vector<8x128xi32>
    %11 = arith.sitofp %10 : vector<8x128xi32> to vector<8x128xf32>
    %12 = vector.extract_strided_slice %0 {offsets = [0, 0], sizes = [4, 1], strides = [1, 1]} : vector<4x8xf32> to vector<4x1xf32>
    %13 = vector.extract_strided_slice %11 {offsets = [0, 0], sizes = [1, 128], strides = [1, 1]} : vector<8x128xf32> to vector<1x128xf32>
    %14 = vector.broadcast %12 : vector<4x1xf32> to vector<4x128xf32>
    %15 = vector.broadcast %13 : vector<1x128xf32> to vector<4x128xf32>
    %16 = arith.mulf %14, %15 : vector<4x128xf32>
    %17 = vector.extract_strided_slice %0 {offsets = [0, 1], sizes = [4, 1], strides = [1, 1]} : vector<4x8xf32> to vector<4x1xf32>
    %18 = vector.extract_strided_slice %11 {offsets = [1, 0], sizes = [1, 128], strides = [1, 1]} : vector<8x128xf32> to vector<1x128xf32>
    %19 = vector.broadcast %17 : vector<4x1xf32> to vector<4x128xf32>
    %20 = vector.broadcast %18 : vector<1x128xf32> to vector<4x128xf32>
    %21 = arith.mulf %19, %20 : vector<4x128xf32>
    %22 = arith.addf %16, %21 : vector<4x128xf32>
    %23 = vector.extract_strided_slice %0 {offsets = [0, 2], sizes = [4, 1], strides = [1, 1]} : vector<4x8xf32> to vector<4x1xf32>
    %24 = vector.extract_strided_slice %11 {offsets = [2, 0], sizes = [1, 128], strides = [1, 1]} : vector<8x128xf32> to vector<1x128xf32>
    %25 = vector.broadcast %23 : vector<4x1xf32> to vector<4x128xf32>
    %26 = vector.broadcast %24 : vector<1x128xf32> to vector<4x128xf32>
    %27 = arith.mulf %25, %26 : vector<4x128xf32>
    %28 = arith.addf %22, %27 : vector<4x128xf32>
    %29 = vector.extract_strided_slice %0 {offsets = [0, 3], sizes = [4, 1], strides = [1, 1]} : vector<4x8xf32> to vector<4x1xf32>
    %30 = vector.extract_strided_slice %11 {offsets = [3, 0], sizes = [1, 128], strides = [1, 1]} : vector<8x128xf32> to vector<1x128xf32>
    %31 = vector.broadcast %29 : vector<4x1xf32> to vector<4x128xf32>
    %32 = vector.broadcast %30 : vector<1x128xf32> to vector<4x128xf32>
    %33 = arith.mulf %31, %32 : vector<4x128xf32>
    %34 = arith.addf %28, %33 : vector<4x128xf32>
    %35 = vector.extract_strided_slice %0 {offsets = [0, 4], sizes = [4, 1], strides = [1, 1]} : vector<4x8xf32> to vector<4x1xf32>
    %36 = vector.extract_strided_slice %11 {offsets = [4, 0], sizes = [1, 128], strides = [1, 1]} : vector<8x128xf32> to vector<1x128xf32>
    %37 = vector.broadcast %35 : vector<4x1xf32> to vector<4x128xf32>
    %38 = vector.broadcast %36 : vector<1x128xf32> to vector<4x128xf32>
    %39 = arith.mulf %37, %38 : vector<4x128xf32>
    %40 = arith.addf %34, %39 : vector<4x128xf32>
    %41 = vector.extract_strided_slice %0 {offsets = [0, 5], sizes = [4, 1], strides = [1, 1]} : vector<4x8xf32> to vector<4x1xf32>
    %42 = vector.extract_strided_slice %11 {offsets = [5, 0], sizes = [1, 128], strides = [1, 1]} : vector<8x128xf32> to vector<1x128xf32>
    %43 = vector.broadcast %41 : vector<4x1xf32> to vector<4x128xf32>
    %44 = vector.broadcast %42 : vector<1x128xf32> to vector<4x128xf32>
    %45 = arith.mulf %43, %44 : vector<4x128xf32>
    %46 = arith.addf %40, %45 : vector<4x128xf32>
    %47 = vector.extract_strided_slice %0 {offsets = [0, 6], sizes = [4, 1], strides = [1, 1]} : vector<4x8xf32> to vector<4x1xf32>
    %48 = vector.extract_strided_slice %11 {offsets = [6, 0], sizes = [1, 128], strides = [1, 1]} : vector<8x128xf32> to vector<1x128xf32>
    %49 = vector.broadcast %47 : vector<4x1xf32> to vector<4x128xf32>
    %50 = vector.broadcast %48 : vector<1x128xf32> to vector<4x128xf32>
    %51 = arith.mulf %49, %50 : vector<4x128xf32>
    %52 = arith.addf %46, %51 : vector<4x128xf32>
    %53 = vector.extract_strided_slice %0 {offsets = [0, 7], sizes = [4, 1], strides = [1, 1]} : vector<4x8xf32> to vector<4x1xf32>
    %54 = vector.extract_strided_slice %11 {offsets = [7, 0], sizes = [1, 128], strides = [1, 1]} : vector<8x128xf32> to vector<1x128xf32>
    %55 = vector.broadcast %53 : vector<4x1xf32> to vector<4x128xf32>
    %56 = vector.broadcast %54 : vector<1x128xf32> to vector<4x128xf32>
    %57 = arith.mulf %55, %56 : vector<4x128xf32>
    %58 = arith.addf %52, %57 : vector<4x128xf32>
    %59 = vector.extract_strided_slice %6 {offsets = [1, 0], sizes = [1, 128], strides = [1, 1]} : vector<2x128xi32> to vector<1x128xi32>
    %60 = vector.broadcast %59 : vector<1x128xi32> to vector<8x128xi32>
    %61 = arith.cmpi eq, %2, %60 : vector<8x128xi32>
    %62 = arith.extui %61 : vector<8x128xi1> to vector<8x128xi32>
    %63 = arith.sitofp %62 : vector<8x128xi32> to vector<8x128xf32>
    %64 = vector.extract_strided_slice %1 {offsets = [0, 0], sizes = [4, 1], strides = [1, 1]} : vector<4x8xf32> to vector<4x1xf32>
    %65 = vector.extract_strided_slice %63 {offsets = [0, 0], sizes = [1, 128], strides = [1, 1]} : vector<8x128xf32> to vector<1x128xf32>
    %66 = vector.broadcast %64 : vector<4x1xf32> to vector<4x128xf32>
    %67 = vector.broadcast %65 : vector<1x128xf32> to vector<4x128xf32>
    %68 = arith.mulf %66, %67 : vector<4x128xf32>
    %69 = vector.extract_strided_slice %1 {offsets = [0, 1], sizes = [4, 1], strides = [1, 1]} : vector<4x8xf32> to vector<4x1xf32>
    %70 = vector.extract_strided_slice %63 {offsets = [1, 0], sizes = [1, 128], strides = [1, 1]} : vector<8x128xf32> to vector<1x128xf32>
    %71 = vector.broadcast %69 : vector<4x1xf32> to vector<4x128xf32>
    %72 = vector.broadcast %70 : vector<1x128xf32> to vector<4x128xf32>
    %73 = arith.mulf %71, %72 : vector<4x128xf32>
    %74 = arith.addf %68, %73 : vector<4x128xf32>
    %75 = vector.extract_strided_slice %1 {offsets = [0, 2], sizes = [4, 1], strides = [1, 1]} : vector<4x8xf32> to vector<4x1xf32>
    %76 = vector.extract_strided_slice %63 {offsets = [2, 0], sizes = [1, 128], strides = [1, 1]} : vector<8x128xf32> to vector<1x128xf32>
    %77 = vector.broadcast %75 : vector<4x1xf32> to vector<4x128xf32>
    %78 = vector.broadcast %76 : vector<1x128xf32> to vector<4x128xf32>
    %79 = arith.mulf %77, %78 : vector<4x128xf32>
    %80 = arith.addf %74, %79 : vector<4x128xf32>
    %81 = vector.extract_strided_slice %1 {offsets = [0, 3], sizes = [4, 1], strides = [1, 1]} : vector<4x8xf32> to vector<4x1xf32>
    %82 = vector.extract_strided_slice %63 {offsets = [3, 0], sizes = [1, 128], strides = [1, 1]} : vector<8x128xf32> to vector<1x128xf32>
    %83 = vector.broadcast %81 : vector<4x1xf32> to vector<4x128xf32>
    %84 = vector.broadcast %82 : vector<1x128xf32> to vector<4x128xf32>
    %85 = arith.mulf %83, %84 : vector<4x128xf32>
    %86 = arith.addf %80, %85 : vector<4x128xf32>
    %87 = vector.extract_strided_slice %1 {offsets = [0, 4], sizes = [4, 1], strides = [1, 1]} : vector<4x8xf32> to vector<4x1xf32>
    %88 = vector.extract_strided_slice %63 {offsets = [4, 0], sizes = [1, 128], strides = [1, 1]} : vector<8x128xf32> to vector<1x128xf32>
    %89 = vector.broadcast %87 : vector<4x1xf32> to vector<4x128xf32>
    %90 = vector.broadcast %88 : vector<1x128xf32> to vector<4x128xf32>
    %91 = arith.mulf %89, %90 : vector<4x128xf32>
    %92 = arith.addf %86, %91 : vector<4x128xf32>
    %93 = vector.extract_strided_slice %1 {offsets = [0, 5], sizes = [4, 1], strides = [1, 1]} : vector<4x8xf32> to vector<4x1xf32>
    %94 = vector.extract_strided_slice %63 {offsets = [5, 0], sizes = [1, 128], strides = [1, 1]} : vector<8x128xf32> to vector<1x128xf32>
    %95 = vector.broadcast %93 : vector<4x1xf32> to vector<4x128xf32>
    %96 = vector.broadcast %94 : vector<1x128xf32> to vector<4x128xf32>
    %97 = arith.mulf %95, %96 : vector<4x128xf32>
    %98 = arith.addf %92, %97 : vector<4x128xf32>
    %99 = vector.extract_strided_slice %1 {offsets = [0, 6], sizes = [4, 1], strides = [1, 1]} : vector<4x8xf32> to vector<4x1xf32>
    %100 = vector.extract_strided_slice %63 {offsets = [6, 0], sizes = [1, 128], strides = [1, 1]} : vector<8x128xf32> to vector<1x128xf32>
    %101 = vector.broadcast %99 : vector<4x1xf32> to vector<4x128xf32>
    %102 = vector.broadcast %100 : vector<1x128xf32> to vector<4x128xf32>
    %103 = arith.mulf %101, %102 : vector<4x128xf32>
    %104 = arith.addf %98, %103 : vector<4x128xf32>
    %105 = vector.extract_strided_slice %1 {offsets = [0, 7], sizes = [4, 1], strides = [1, 1]} : vector<4x8xf32> to vector<4x1xf32>
    %106 = vector.extract_strided_slice %63 {offsets = [7, 0], sizes = [1, 128], strides = [1, 1]} : vector<8x128xf32> to vector<1x128xf32>
    %107 = vector.broadcast %105 : vector<4x1xf32> to vector<4x128xf32>
    %108 = vector.broadcast %106 : vector<1x128xf32> to vector<4x128xf32>
    %109 = arith.mulf %107, %108 : vector<4x128xf32>
    %110 = arith.addf %104, %109 : vector<4x128xf32>
    %111 = vector.extract_strided_slice %110 {offsets = [0, 0], sizes = [1, 128], strides = [1, 1]} : vector<4x128xf32> to vector<1x128xf32>
    %112 = vector.extract_strided_slice %58 {offsets = [0, 0], sizes = [1, 128], strides = [1, 1]} : vector<4x128xf32> to vector<1x128xf32>
    %113 = arith.mulf %111, %112 : vector<1x128xf32>
    %114 = vector.extract_strided_slice %110 {offsets = [1, 0], sizes = [1, 128], strides = [1, 1]} : vector<4x128xf32> to vector<1x128xf32>
    %115 = vector.extract_strided_slice %58 {offsets = [1, 0], sizes = [1, 128], strides = [1, 1]} : vector<4x128xf32> to vector<1x128xf32>
    %116 = arith.mulf %114, %115 : vector<1x128xf32>
    %117 = arith.addf %113, %116 : vector<1x128xf32>
    %118 = vector.extract_strided_slice %110 {offsets = [2, 0], sizes = [1, 128], strides = [1, 1]} : vector<4x128xf32> to vector<1x128xf32>
    %119 = vector.extract_strided_slice %58 {offsets = [2, 0], sizes = [1, 128], strides = [1, 1]} : vector<4x128xf32> to vector<1x128xf32>
    %120 = arith.mulf %118, %119 : vector<1x128xf32>
    %121 = arith.addf %117, %120 : vector<1x128xf32>
    %122 = vector.extract_strided_slice %110 {offsets = [3, 0], sizes = [1, 128], strides = [1, 1]} : vector<4x128xf32> to vector<1x128xf32>
    %123 = vector.extract_strided_slice %58 {offsets = [3, 0], sizes = [1, 128], strides = [1, 1]} : vector<4x128xf32> to vector<1x128xf32>
    %124 = arith.mulf %122, %123 : vector<1x128xf32>
    %125 = arith.addf %121, %124 : vector<1x128xf32>
    %126 = arith.addf %3, %125 : vector<1x128xf32>
    %c1_i32 = arith.constant 1 : i32
    %127 = vector.shape_cast %126 : vector<1x128xf32> to vector<1x1x128xf32>
    %c0_5 = arith.constant 0 : index
    %c0_6 = arith.constant 0 : index
    %c0_7 = arith.constant 0 : index
    %128 = vector.load %arg4[%c0_5, %c0_6, %c0_7] : memref<1x1x128xf32, #tpu.memory_space<vmem>>, vector<1x1x128xf32>
    tpu.vector_store %arg4[%c0_5, %c0_6, %c0_7], %127 {strides = array<i32>} : memref<1x1x128xf32, #tpu.memory_space<vmem>>, vector<1x1x128xf32>,
    return
  }
  func.func @transform_0(%arg0: i32) -> (i32, i32) {
    %c0_i32 = arith.constant 0 : i32
    %c0_i32_0 = arith.constant 0 : i32
    %c0_i32_1 = arith.constant 0 : i32
    return %c0_i32, %c0_i32_0 : i32, i32
  }
  func.func @transform_1(%arg0: i32) -> (i32, i32) {
    %c0_i32 = arith.constant 0 : i32
    %c0_i32_0 = arith.constant 0 : i32
    %c0_i32_1 = arith.constant 0 : i32
    return %c0_i32, %c0_i32_0 : i32, i32
  }
  func.func @transform_2(%arg0: i32) -> (i32, i32, i32) {
    %c0_i32 = arith.constant 0 : i32
    %c0_i32_0 = arith.constant 0 : i32
    %c0_i32_1 = arith.constant 0 : i32
    return %arg0, %c0_i32, %c0_i32_0 : i32, i32, i32
  }
  func.func @transform_3(%arg0: i32) -> (i32, i32, i32) {
    %c0_i32 = arith.constant 0 : i32
    %c0_i32_0 = arith.constant 0 : i32
    %c0_i32_1 = arith.constant 0 : i32
    return %arg0, %c0_i32, %c0_i32_0 : i32, i32, i32
  }
}

</mosaic_0001>

<bundles_post_ra>
// kernel: _clique_level_partials.1
= control target key start
LH: loop header
LB: loop body
LE: loop exit
PB: predicated region body
PF: predicated region fallthrough
CT: control target
= control target key end

     0   :  { %8 = vsyncpa [#allocation3], 0  ;;  %s391_s0 = inlined_call_operand.hbm [shape: f32[4,8], index: 0, kind: input, shape index: {}]   ;;  %s392_s1 = inlined_call_operand.hbm [shape: f32[4,8], index: 1, kind: input, shape index: {}]   ;;  %s393_s2 = inlined_call_operand.hbm [shape: s32[1,2,128], index: 2, kind: input, shape index: {}]   ;;  %s394_s3 = inlined_call_operand.hbm [shape: f32[1,1,128], index: 3, kind: output, shape index: {}]  }
   0x1   :  { %9 = vsyncpa [#allocation6], 0  ;;  %s27_s14 = sshll.u32 %s392_s1, 4  ;;  %s28_s14 = int_to_ptr.hbm [resolvable:$true] %s27_s14 }
   0x2   :  { %10 = vsyncpa [#allocation4], 0  ;;  %s346_s15 = smov [#allocation5]   ;;  %s16_s19 = sshll.u32 %s391_s0, 4  ;;  %s17_s19 = int_to_ptr.hbm [resolvable:$true] %s16_s19 }
   0x3   :  { %s29_s16 = sshll.u32 %s346_s15, 4  ;;  %s347_s20 = smov [#allocation2]   ;;  %s30_s16 = int_to_ptr.vmem [resolvable:$true] %s29_s16 }
   0x4   :  { %32 = dma.hbm_to_vmem [thread:$0]  %s28_s14, 64, %s30_s16, [#allocation6]  }
   0x5   :  { %s18_s21 = sshll.u32 %s347_s20, 4  ;;  %s38_s24 = sshll.u32 %s393_s2, 4  ;;  %s19_s21 = int_to_ptr.vmem [resolvable:$true] %s18_s21  ;;  %s39_s24 = int_to_ptr.hbm [resolvable:$true] %s38_s24 }
   0x6   :  { %21 = dma.hbm_to_vmem [thread:$0]  %s17_s19, 64, %s19_s21, [#allocation3]  }
   0x7   :  { %s348_s1 = smov [#allocation7]  }
   0x8   :  { %s40_s25 = sshll.u32 %s348_s1, 4  ;;  %s41_s25 = int_to_ptr.vmem [resolvable:$true] %s40_s25 }
   0x9   :  { %43 = dma.hbm_to_vmem [thread:$0]  %s39_s24, 32, %s41_s25, [#allocation6]  }
   0xa   :  { %340 = dma.done.wait [#allocation3], 64  }
   0xb   :  { %341 = vsyncadd [#allocation3], 4294967232 }
   0xc   :  { %342 = dma.done.wait [#allocation6], 96  }
   0xd   :  { %343 = vsyncadd [#allocation6], 4294967200  ;;  %v349_v0 = vmov 2   ;;  %v350_v1 = vmov 0   ;;  %v351_v2 = vmov 4   ;;  %v352_v4 = vmov 3  }
   0xe   :  { %229 = vset.pattern.permute.xlu1 %v349_v0  ;;  %227 = vset.pattern.permute.xlu0 %v350_v1  ;;  %v56_v3 = vld [vmem:[#allocation2] sm:$0xf]  ;;  %v353_v5 = vmov 1   ;;  %v57_v6 = vld [vmem:[#allocation5] sm:$0xf]  ;;  %v354_v7 = vmov 6   ;;  %v58_v13 = vlaneseq }
   0xf   :  { %231 = vset.pattern.permute.xlu2 %v351_v2  ;;  %80 = vperm.xlu1 %229, %v56_v3   ;;  %v355_v8 = vmov 5   ;;  %v356_v9 = vmov 7   ;;  %v60_v14 = vld [vmem:[#allocation7] sm:$0x3]  ;;  %v357_v21 = vmov 0.0   ;;  %s358_s0 = smov [#allocation8]  }
  0x10   :  { %67 = vperm.xlu0 %227, %v56_v3   ;;  %94 = vperm.xlu2 %231, %v56_v3   ;;  %v59_v17 = vshrl.u32 %v58_v13, 7  ;;  %v61_v18 = vperm.slane %v60_v14, 0  ;;  %v121_v19 = vperm.slane %v60_v14, 1  ;;  %s199_s2 = sshll.u32 %s358_s0, 4  ;;  %s201_s28 = sshll.u32 %s394_s3, 4  ;;  %s200_s2 = int_to_ptr.vmem [resolvable:$true] %s199_s2  ;;  %s202_s28 = int_to_ptr.hbm [resolvable:$true] %s201_s28 }
  0x12   :  { %vm62_vm0 = vcmp.eq.s32.totalorder %v59_v17, %v61_v18  ;;  %vm122_vm1 = vcmp.eq.s32.totalorder %v59_v17, %v121_v19 }
  0x13   :  { %v212_v22 = vsel %vm62_vm0, 1.0, %v357_v21  ;;  %v213_v26 = vsel %vm122_vm1, 1.0, %v357_v21 }
  0x14   :  { %v70_v23 = vperm.slane %v212_v22, 0  ;;  %v76_v24 = vperm.slane %v212_v22, 1  ;;  %v136_v28 = vperm.slane %v213_v26, 1  ;;  %v130_v29 = vperm.slane %v213_v26, 0 }
  0x15   :  { %v83_v33 = vperm.slane %v212_v22, 2  ;;  %v143_v36 = vperm.slane %v213_v26, 2  ;;  %v90_v40 = vperm.slane %v212_v22, 3  ;;  %v150_v42 = vperm.slane %v213_v26, 3 }
  0x16   :  { %v157_v46 = vperm.slane %v213_v26, 4  ;;  %v97_v47 = vperm.slane %v212_v22, 4  ;;  %v164_v52 = vperm.slane %v213_v26, 5  ;;  %v104_v53 = vperm.slane %v212_v22, 5 }
  0x17   :  { %230 = vset.pattern.permute.xlu1 %v352_v4  ;;  %v171_v59 = vperm.slane %v213_v26, 6 }
  0x18   :  { %228 = vset.pattern.permute.xlu0 %v353_v5  ;;  %87 = vperm.xlu1 %230, %v56_v3  }
  0x19   :  { %73 = vperm.xlu0 %228, %v56_v3   ;;  %232 = vset.pattern.permute.xlu2 %v350_v1 }
  0x1a   :  { %127 = vperm.xlu2 %232, %v57_v6  }
  0x20   :  { %233 = vset.pattern.permute.xlu1 %v353_v5 }
  0x21   :  { %235 = vset.pattern.permute.xlu0 %v352_v4  ;;  %133 = vperm.xlu1 %233, %v57_v6   ;;  %v178_v4 = vperm.slane %v213_v26, 7 }
  0x22   :  { %147 = vperm.xlu0 %235, %v57_v6   ;;  %234 = vset.pattern.permute.xlu2 %v349_v0  ;;  %v111_v0 = vperm.slane %v212_v22, 6 }
  0x23   :  { %140 = vperm.xlu2 %234, %v57_v6  }
  0x29   :  { %236 = vset.pattern.permute.xlu1 %v351_v2 }
  0x2a   :  { %240 = vset.pattern.permute.xlu0 %v354_v7  ;;  %154 = vperm.xlu1 %236, %v57_v6  }
  0x2b   :  { %168 = vperm.xlu0 %240, %v57_v6   ;;  %237 = vset.pattern.permute.xlu2 %v355_v8 }
  0x2c   :  { %101 = vperm.xlu2 %237, %v56_v3  }
  0x32   :  { %238 = vset.pattern.permute.xlu1 %v355_v8  ;;  %v118_v8 = vperm.slane %v212_v22, 7 }
  0x33   :  { %243 = vset.pattern.permute.xlu0 %v356_v9  ;;  %161 = vperm.xlu1 %238, %v57_v6  }
  0x34   :  { %239 = vset.pattern.permute.xlu2 %v354_v7 }
  0x35   :  { %108 = vperm.xlu2 %239, %v56_v3  }
  0x3b   :  { %241 = vset.pattern.permute.xlu1 %v356_v9 }
  0x3c   :  { %115 = vperm.xlu1 %241, %v56_v3  }
  0x3d   :  { %242 = vset.pattern.permute.xlu2 %v356_v9 }
  0x3e   :  { %175 = vperm.xlu2 %242, %v57_v6  }
  0x6a   :  { %v95_v10 = vpop.permute.xlu2 %94 }
  0x6b   :  { %v98_v56 = vmul.f32 %v97_v47, %v95_v10 }
  0x74   :  { %v128_v12 = vpop.permute.xlu2 %127 }
  0x75   :  { %v131_v35 = vmul.f32 %v130_v29, %v128_v12 }
  0x7d   :  { %v141_v20 = vpop.permute.xlu2 %140 }
  0x7e   :  { %v144_v44 = vmul.f32 %v143_v36, %v141_v20 }
  0x81   :  { %v81_v11 = vpop.permute.xlu1 %80 }
  0x82   :  { %v68_v15 = vpop.permute.xlu0 %67  ;;  %v84_v39 = vmul.f32 %v83_v33, %v81_v11 }
  0x83   :  { %v71_v30 = vmul.f32 %v70_v23, %v68_v15 }
  0x86   :  { %v102_v32 = vpop.permute.xlu2 %101 }
  0x87   :  { %v105_v63 = vmul.f32 %v104_v53, %v102_v32 }
  0x8a   :  { %v88_v16 = vpop.permute.xlu1 %87 }
  0x8b   :  { %v74_v27 = vpop.permute.xlu0 %73  ;;  %v91_v48 = vmul.f32 %v90_v40, %v88_v16 }
  0x8c   :  { %v77_v31 = vmul.f32 %v76_v24, %v74_v27 }
  0x8e   :  { %v78_v37 = vadd.f32 %v77_v31, %v71_v30 }
  0x8f   :  { %v109_v51 = vpop.permute.xlu2 %108 }
  0x90   :  { %v85_v45 = vadd.f32 %v84_v39, %v78_v37  ;;  %v112_v7 = vmul.f32 %v111_v0, %v109_v51 }
  0x92   :  { %v92_v54 = vadd.f32 %v91_v48, %v85_v45 }
  0x93   :  { %v134_v25 = vpop.permute.xlu1 %133 }
  0x94   :  { %v137_v34 = vmul.f32 %v136_v28, %v134_v25  ;;  %v148_v43 = vpop.permute.xlu0 %147  ;;  %v99_v62 = vadd.f32 %v98_v56, %v92_v54 }
  0x95   :  { %v151_v50 = vmul.f32 %v150_v42, %v148_v43 }
  0x96   :  { %v138_v41 = vadd.f32 %v137_v34, %v131_v35  ;;  %v106_v6 = vadd.f32 %v105_v63, %v99_v62 }
  0x98   :  { %v145_v49 = vadd.f32 %v144_v44, %v138_v41  ;;  %v176_v5 = vpop.permute.xlu2 %175  ;;  %v113_v10 = vadd.f32 %v112_v7, %v106_v6 }
  0x99   :  { %v179_v11 = vmul.f32 %v178_v4, %v176_v5 }
  0x9a   :  { %v152_v57 = vadd.f32 %v151_v50, %v145_v49 }
  0x9c   :  { %v155_v38 = vpop.permute.xlu1 %154 }
  0x9d   :  { %v158_v55 = vmul.f32 %v157_v46, %v155_v38  ;;  %v169_v61 = vpop.permute.xlu0 %168 }
  0x9e   :  { %v172_v3 = vmul.f32 %v171_v59, %v169_v61 }
  0x9f   :  { %v159_v1 = vadd.f32 %v158_v55, %v152_v57 }
  0xa5   :  { %v162_v58 = vpop.permute.xlu1 %161 }
  0xa6   :  { %v165_v60 = vmul.f32 %v164_v52, %v162_v58 }
  0xa8   :  { %v166_v2 = vadd.f32 %v165_v60, %v159_v1 }
  0xaa   :  { %v173_v9 = vadd.f32 %v172_v3, %v166_v2 }
  0xac   :  { %v180_v14 = vadd.f32 %v179_v11, %v173_v9 }
  0xae   :  { %v116_v12 = vpop.permute.xlu1 %115 }
  0xaf   :  { %v119_v13 = vmul.f32 %v118_v8, %v116_v12 }
  0xb1   :  { %v120_v15 = vadd.f32 %v119_v13, %v113_v10 }
  0xb3   :  { %v181_v16 = vmul.f32 %v180_v14, %v120_v15 }
  0xb5   :  { %v183_v17 = vrot.slane %v181_v16, 1  ;;  %v186_v19 = vrot.slane %v181_v16, 2  ;;  %v189_v21 = vrot.slane %v181_v16, 3 }
  0xb7   :  { %v185_v18 = vadd.f32 %v183_v17, %v181_v16 }
  0xb9   :  { %v188_v20 = vadd.f32 %v186_v19, %v185_v18 }
  0xbb   :  { %v191_v22 = vadd.f32 %v189_v21, %v188_v20 }
  0xbd   :  { %193 = vst [vmem:[#allocation8] sm:$0x1] %v191_v22 }
  0xbe   :  { %204 = dma.vmem_to_hbm [thread:$0]  %s200_s2, 16, %s202_s28, [#allocation4]  }
  0xbf   :  { %344 = dma.done.wait [#allocation4], 16  }
  0xc0   :  { %345 = vsyncadd [#allocation4], 4294967280 }
  0xc1   :  { %209 = vsyncpa [#allocation3], 1 }
  0xc2   :  { %210 = vsyncpa [#allocation6], 1 }
  0xc3   :  { %211 = vsyncpa [#allocation4], 1 }

</bundles_post_ra>
